<compile_context>
chip_gen: v7x
topology: tpu7x:2x2x1
jax: 0.10.0
libtpu: 0.0.40
codegen_flags: <defaults>
</compile_context>

<pallas_src>
import functools

import jax
import jax.numpy as jnp
from jax.experimental import pallas as pl
from jax.experimental.pallas import tpu as pltpu


# ---------------------------------------------------------------------------
# Kernels
# ---------------------------------------------------------------------------
def _se_fused_kernel(x_ref, w1_ref, w2_ref, o_ref, *, inv_hw):
    """Fast path: pool -> FC -> sigmoid -> rescale for one (B_TILE, C, HW) block."""
    # Squeeze: global average pool over the spatial (lane) axis, accumulated
    # in f32.  The block covers the full HW extent, so no mask is needed.
    pooled = jnp.sum(x_ref[...].astype(jnp.float32), axis=-1) * inv_hw   # (B_TILE, C)

    # Excitation: bias-free Linear -> ReLU -> Linear -> Sigmoid, batched over
    # the whole batch tile (one tiny matmul pair per grid step).
    h = jnp.dot(pooled, w1_ref[...].astype(jnp.float32),
                preferred_element_type=jnp.float32)
    h = jnp.maximum(h, 0.0)
    z = jnp.dot(h, w2_ref[...].astype(jnp.float32),
                preferred_element_type=jnp.float32)
    gate = 1.0 / (1.0 + jnp.exp(-z))                                     # (B_TILE, C) f32

    # Scale: re-index x_ref (stream the block from VMEM again), multiply in
    # f32 and cast only at the store (matches the f32 reference for bf16 x).
    o_ref[...] = (x_ref[...].astype(jnp.float32) * gate[:, :, None]).astype(o_ref.dtype)


def _se_pool_gate_kernel(x_ref, w1_ref, w2_ref, g_ref, *, hw_total, hw_tile, inv_hw):
    """Fallback pass 1: masked spatial-tile pooling + FC gate.

    x_ref: (1, C, HW_TILE); g_ref: (1, 1, C) f32, resident accumulator across
    the spatial-tile grid axis (constant output index map).
    """
    t = pl.program_id(1)

    @pl.when(t == 0)
    def _():
        g_ref[...] = jnp.zeros_like(g_ref)

    # Mask the ragged tail of the last spatial tile (OOB block reads are
    # undefined, so select before summing).
    lane = jax.lax.broadcasted_iota(jnp.int32, (1, 1, hw_tile), 2)
    valid = (t * hw_tile + lane) < hw_total
    xs = jnp.where(valid, x_ref[...].astype(jnp.float32), 0.0)
    g_ref[...] += jnp.sum(xs, axis=-1)[:, None, :]                        # (1, 1, C)

    @pl.when(t == pl.num_programs(1) - 1)
    def _():
        pooled = g_ref[...].reshape(1, -1) * inv_hw                       # (1, C)
        h = jnp.maximum(jnp.dot(pooled, w1_ref[...].astype(jnp.float32),
                                preferred_element_type=jnp.float32), 0.0)
        z = jnp.dot(h, w2_ref[...].astype(jnp.float32),
                    preferred_element_type=jnp.float32)
        g_ref[...] = (1.0 / (1.0 + jnp.exp(-z)))[:, None, :]              # final gate


def _se_scale_kernel(x_ref, g_ref, o_ref):
    """Fallback pass 2: rescale one (1, C, HW_TILE) block by its gate."""
    gate = g_ref[...].reshape(1, -1)[:, :, None]                          # (1, C, 1) f32
    o_ref[...] = (x_ref[...].astype(jnp.float32) * gate).astype(o_ref.dtype)


# ---------------------------------------------------------------------------
# Wrapper
# ---------------------------------------------------------------------------
def _vmem_policy():
    """Return (per-block budget, vmem_limit ceiling) for this TPU generation."""
    cap = 64 * 1024 * 1024
    try:
        info = pltpu.get_tpu_info()
        cap = int(getattr(info, "vmem_capacity_bytes", cap))
    except Exception:
        pass
    if cap >= 128 * 1024 * 1024:                  # v5e / v6e: 128 MiB VMEM
        return 20 * 1024 * 1024, 104 * 1024 * 1024
    return 10 * 1024 * 1024, 52 * 1024 * 1024     # v7x: 64 MiB per TC, keep headroom


def _largest_divisor_leq(n, cap):
    cap = max(1, min(n, cap))
    for d in range(cap, 0, -1):
        if n % d == 0:
            return d
    return 1


def se_block(x, w1, w2, *, block_budget_bytes=None, donate_x=False):
    """SE forward.  x: (B, C, H, W) NCHW; w1: (C, C//r); w2: (C//r, C) (pre-transposed)."""
    B, C, H, W = x.shape
    HW = H * W
    itemsize = x.dtype.itemsize
    hidden = w1.shape[1]

    budget, vmem_ceiling = _vmem_policy()
    if block_budget_bytes is not None:
        budget = int(block_budget_bytes)

    x3 = x.reshape(B, C, HW)                       # free: contiguous NCHW reshape
    w_bytes = int(w1.size) * w1.dtype.itemsize + int(w2.size) * w2.dtype.itemsize
    bytes_per_sample = C * HW * itemsize

    flops = 2 * B * C * HW + 4 * B * C * hidden    # pool + scale + two tiny FCs
    cost = pl.CostEstimate(flops=flops, transcendentals=B * C,
                           bytes_accessed=2 * B * C * HW * itemsize + w_bytes + 4 * B * C)
    aliases = {0: 0} if donate_x else {}

    if bytes_per_sample <= budget:
        # ---- fast path: single fused kernel, grid over batch tiles --------
        max_rows = max(1, budget // max(1, bytes_per_sample))
        # Keep >= 2 batch tiles when possible so "parallel" sharding can use
        # both v7x TensorCores (one extra ~0.35us step elsewhere is noise).
        cap = min(max_rows, B // 2) if B >= 2 else 1
        b_tile = _largest_divisor_leq(B, cap)
        grid = (B // b_tile,)

        block_bytes = b_tile * bytes_per_sample
        vmem_limit = int(min(vmem_ceiling,
                             max(32 * 1024 * 1024,
                                 4 * block_bytes + 4 * w_bytes + (4 << 20))))

        kernel = functools.partial(_se_fused_kernel, inv_hw=1.0 / HW)
        out3 = pl.pallas_call(
            kernel,
            grid=grid,
            out_shape=jax.ShapeDtypeStruct((B, C, HW), x.dtype),
            in_specs=[
                pl.BlockSpec((b_tile, C, HW), lambda b: (b, 0, 0)),   # x tile
                pl.BlockSpec((C, hidden), lambda b: (0, 0)),          # w1, resident
                pl.BlockSpec((hidden, C), lambda b: (0, 0)),          # w2, resident
            ],
            out_specs=pl.BlockSpec((b_tile, C, HW), lambda b: (b, 0, 0)),
            compiler_params=pltpu.CompilerParams(
                dimension_semantics=("parallel",),
                vmem_limit_bytes=vmem_limit,
            ),
            cost_estimate=cost,
            input_output_aliases=aliases,
        )(x3, w1, w2)
        return out3.reshape(B, C, H, W)

    # ---- fallback: one sample does not fit a block (large C*HW) -----------
    # Two passes over x from HBM (pool+gate, then scale), spatial axis tiled
    # in multiples of 128 lanes with in-kernel masking of the ragged tail.
    lanes = max(1, budget // max(1, C * itemsize))
    hw_tile = max(128, (lanes // 128) * 128)
    hw_tile = min(hw_tile, ((HW + 127) // 128) * 128)
    n_hw = pl.cdiv(HW, hw_tile)

    block_bytes = C * hw_tile * itemsize
    vmem_limit = int(min(vmem_ceiling,
                         max(32 * 1024 * 1024,
                             4 * block_bytes + 4 * w_bytes + (4 << 20))))

    pool_kernel = functools.partial(_se_pool_gate_kernel, hw_total=HW,
                                    hw_tile=hw_tile, inv_hw=1.0 / HW)
    gate = pl.pallas_call(
        pool_kernel,
        grid=(B, n_hw),
        out_shape=jax.ShapeDtypeStruct((B, 1, C), jnp.float32),
        in_specs=[
            pl.BlockSpec((1, C, hw_tile), lambda b, t: (b, 0, t)),
            pl.BlockSpec((C, hidden), lambda b, t: (0, 0)),
            pl.BlockSpec((hidden, C), lambda b, t: (0, 0)),
        ],
        out_specs=pl.BlockSpec((1, 1, C), lambda b, t: (b, 0, 0)),
        compiler_params=pltpu.CompilerParams(
            dimension_semantics=("parallel", "arbitrary"),
            vmem_limit_bytes=vmem_limit,
        ),
        cost_estimate=pl.CostEstimate(flops=B * C * HW + 4 * B * C * hidden,
                                      transcendentals=B * C,
                                      bytes_accessed=B * C * HW * itemsize + w_bytes),
    )(x3, w1, w2)

    out3 = pl.pallas_call(
        _se_scale_kernel,
        grid=(B, n_hw),
        out_shape=jax.ShapeDtypeStruct((B, C, HW), x.dtype),
        in_specs=[
            pl.BlockSpec((1, C, hw_tile), lambda b, t: (b, 0, t)),
            pl.BlockSpec((1, 1, C), lambda b, t: (b, 0, 0)),
        ],
        out_specs=pl.BlockSpec((1, C, hw_tile), lambda b, t: (b, 0, t)),
        compiler_params=pltpu.CompilerParams(
            dimension_semantics=("parallel", "parallel"),
            vmem_limit_bytes=vmem_limit,
        ),
        cost_estimate=pl.CostEstimate(flops=B * C * HW, transcendentals=0,
                                      bytes_accessed=2 * B * C * HW * itemsize + 4 * B * C),
        input_output_aliases=aliases,
    )(x3, gate)
    return out3.reshape(B, C, H, W)


# ---------------------------------------------------------------------------
# Pure-JAX reference (matches the PyTorch forward)
# ---------------------------------------------------------------------------
def se_block_ref(x, w1, w2):
    pooled = jnp.mean(x.astype(jnp.float32), axis=(2, 3))             # (B, C)
    h = jnp.maximum(pooled @ w1.astype(jnp.float32), 0.0)             # (B, C//r)
    y = jax.nn.sigmoid(h @ w2.astype(jnp.float32))                    # (B, C)
    return (x.astype(jnp.float32) * y[:, :, None, None]).astype(x.dtype)


if __name__ == "__main__":
    def make_case(key, B, C, H, W, reduction=4):
        hidden = max(1, C // reduction)
        kx, k1, k2 = jax.random.split(key, 3)
        x = jax.random.normal(kx, (B, C, H, W), dtype=jnp.float32)
        # PyTorch stores Linear weight as (out, in) and computes y = x @ W.T;
        # we pass the already-transposed (in, out) matrices so kernels do x @ W.
        w1 = jax.random.normal(k1, (C, hidden), jnp.float32) * (1.0 / jnp.sqrt(C))
        w2 = jax.random.normal(k2, (hidden, C), jnp.float32) * (1.0 / jnp.sqrt(hidden))
        return x, w1, w2

    key = jax.random.PRNGKey(0)
    ka, kb, kc = jax.random.split(key, 3)
    ok = True

    # 1) Primary small case (fast path, two batch tiles for megacore).
    x, w1, w2 = make_case(ka, 2, 8, 16, 16)
    out = jax.block_until_ready(se_block(x, w1, w2))
    ok &= out.shape == x.shape
    ok &= bool(jnp.allclose(out, se_block_ref(x, w1, w2), atol=1e-5, rtol=1e-5))

    # 2) Non-128-aligned spatial extent + multi-row batch tile (fast path,
    #    exercises full-extent blocks with no padding).
    x, w1, w2 = make_case(kb, 4, 16, 5, 7)
    out = jax.block_until_ready(se_block(x, w1, w2))
    ok &= bool(jnp.allclose(out, se_block_ref(x, w1, w2), atol=1e-5, rtol=1e-5))

    # 3) Force the spatial-tiling fallback (per-sample block over budget) with
    #    a ragged last spatial tile to exercise the in-kernel lane masking.
    x, w1, w2 = make_case(kc, 2, 8, 9, 17)
    out = jax.block_until_ready(se_block(x, w1, w2, block_budget_bytes=4096))
    ok &= bool(jnp.allclose(out, se_block_ref(x, w1, w2), atol=1e-5, rtol=1e-5))

    assert ok
    print("KERNEL_OK")
</pallas_src>

<mosaic_0001>
module attributes {stable_mosaic.version = 11 : i64} {
  func.func @_se_fused_kernel(%arg0: i32, %arg1: memref<1x8x256xf32, #tpu.memory_space<vmem>>, %arg2: memref<8x2xf32, #tpu.memory_space<vmem>>, %arg3: memref<2x8xf32, #tpu.memory_space<vmem>>, %arg4: memref<1x8x256xf32, #tpu.memory_space<vmem>>) attributes {dimension_semantics = [#tpu.dimension_semantics<parallel>], iteration_bounds = array<i64: 2>, scalar_prefetch = 0 : i64, scratch_operands = 0 : i64, tpu.core_type = #tpu.core_type<tc>, window_params = [{transform_indices = @transform_0, window_bounds = array<i64: 1, 8, 256>}, {pipeline_mode = #tpu.pipeline_mode<synchronous>, transform_indices = @transform_1, window_bounds = array<i64: 8, 2>}, {pipeline_mode = #tpu.pipeline_mode<synchronous>, transform_indices = @transform_2, window_bounds = array<i64: 2, 8>}, {transform_indices = @transform_3, window_bounds = array<i64: 1, 8, 256>}]} {
    %c0 = arith.constant 0 : index
    %c0_0 = arith.constant 0 : index
    %c0_1 = arith.constant 0 : index
    %0 = vector.load %arg1[%c0, %c0_0, %c0_1] : memref<1x8x256xf32, #tpu.memory_space<vmem>>, vector<1x8x256xf32>
    %cst = arith.constant dense<0.000000e+00> : vector<1x8xf32>
    %1 = vector.multi_reduction <add>, %0, %cst [2] : vector<1x8x256xf32> to vector<1x8xf32>
    %cst_2 = arith.constant 3.906250e-03 : f32
    %2 = vector.broadcast %cst_2 : f32 to vector<1x8xf32>
    %3 = arith.mulf %1, %2 : vector<1x8xf32>
    %c0_3 = arith.constant 0 : index
    %c0_4 = arith.constant 0 : index
    %4 = vector.load %arg2[%c0_3, %c0_4] : memref<8x2xf32, #tpu.memory_space<vmem>>, vector<8x2xf32>
    %cst_5 = arith.constant dense<0.000000e+00> : vector<1x2xf32>
    %5 = tpu.matmul %3, %4, %cst_5 {dimension_numbers = #tpu.dot_dimension_numbers<[1], [0], [0], [1], [0, 0, 1, 1], [], []>} : vector<1x8xf32>, vector<8x2xf32>, vector<1x2xf32> -> vector<1x2xf32>
    %cst_6 = arith.constant 0.000000e+00 : f32
    %6 = vector.broadcast %cst_6 : f32 to vector<1x2xf32>
    %7 = arith.maximumf %5, %6 : vector<1x2xf32>
    %c0_7 = arith.constant 0 : index
    %c0_8 = arith.constant 0 : index
    %8 = vector.load %arg3[%c0_7, %c0_8] : memref<2x8xf32, #tpu.memory_space<vmem>>, vector<2x8xf32>
    %cst_9 = arith.constant dense<0.000000e+00> : vector<1x8xf32>
    %9 = tpu.matmul %7, %8, %cst_9 {dimension_numbers = #tpu.dot_dimension_numbers<[1], [0], [0], [1], [0, 0, 1, 1], [], []>} : vector<1x2xf32>, vector<2x8xf32>, vector<1x8xf32> -> vector<1x8xf32>
    %cst_10 = arith.constant 0.000000e+00 : f32
    %10 = vector.broadcast %cst_10 : f32 to vector<1x8xf32>
    %11 = arith.subf %10, %9 : vector<1x8xf32>
    %12 = math.exp %11 : vector<1x8xf32>
    %cst_11 = arith.constant 1.000000e+00 : f32
    %13 = vector.broadcast %cst_11 : f32 to vector<1x8xf32>
    %14 = arith.addf %13, %12 : vector<1x8xf32>
    %cst_12 = arith.constant 1.000000e+00 : f32
    %15 = vector.broadcast %cst_12 : f32 to vector<1x8xf32>
    %16 = arith.divf %15, %14 : vector<1x8xf32>
    %c0_13 = arith.constant 0 : index
    %c0_14 = arith.constant 0 : index
    %c0_15 = arith.constant 0 : index
    %17 = vector.load %arg1[%c0_13, %c0_14, %c0_15] : memref<1x8x256xf32, #tpu.memory_space<vmem>>, vector<1x8x256xf32>
    %18 = vector.shape_cast %16 : vector<1x8xf32> to vector<1x8x1xf32>
    %19 = vector.broadcast %18 : vector<1x8x1xf32> to vector<1x8x256xf32>
    %20 = arith.mulf %17, %19 : vector<1x8x256xf32>
    %c0_16 = arith.constant 0 : index
    %c0_17 = arith.constant 0 : index
    %c0_18 = arith.constant 0 : index
    %21 = vector.load %arg4[%c0_16, %c0_17, %c0_18] : memref<1x8x256xf32, #tpu.memory_space<vmem>>, vector<1x8x256xf32>
    tpu.vector_store %arg4[%c0_16, %c0_17, %c0_18], %20 {strides = array<i32>} : memref<1x8x256xf32, #tpu.memory_space<vmem>>, vector<1x8x256xf32>,
    return
  }
  func.func @transform_0(%arg0: i32) -> (i32, i32, i32) {
    %c0_i32 = arith.constant 0 : i32
    %c0_i32_0 = arith.constant 0 : i32
    %c0_i32_1 = arith.constant 0 : i32
    return %arg0, %c0_i32, %c0_i32_0 : i32, i32, i32
  }
  func.func @transform_1(%arg0: i32) -> (i32, i32) {
    %c0_i32 = arith.constant 0 : i32
    %c0_i32_0 = arith.constant 0 : i32
    %c0_i32_1 = arith.constant 0 : i32
    return %c0_i32, %c0_i32_0 : i32, i32
  }
  func.func @transform_2(%arg0: i32) -> (i32, i32) {
    %c0_i32 = arith.constant 0 : i32
    %c0_i32_0 = arith.constant 0 : i32
    %c0_i32_1 = arith.constant 0 : i32
    return %c0_i32, %c0_i32_0 : i32, i32
  }
  func.func @transform_3(%arg0: i32) -> (i32, i32, i32) {
    %c0_i32 = arith.constant 0 : i32
    %c0_i32_0 = arith.constant 0 : i32
    %c0_i32_1 = arith.constant 0 : i32
    return %arg0, %c0_i32, %c0_i32_0 : i32, i32, i32
  }
}

</mosaic_0001>

<bundles_post_ra>
// kernel: tpu_custom_call.1
= control target key start
LH: loop header
LB: loop body
LE: loop exit
PB: predicated region body
PF: predicated region fallthrough
CT: control target
= control target key end

     0   :  { %8 = vsyncpa [#allocation3], 0  ;;  %s834_s0 = inlined_call_operand.hbm [shape: f32[2,8,256], index: 0, kind: input, shape index: {}]   ;;  %s835_s1 = inlined_call_operand.vmem [shape: f32[8,2], index: 1, kind: input, shape index: {}]   ;;  %s836_s2 = inlined_call_operand.vmem [shape: f32[2,8], index: 2, kind: input, shape index: {}]   ;;  %s837_s3 = inlined_call_operand.hbm [shape: f32[2,8,256], index: 3, kind: output, shape index: {}]  }
   0x1   :  { %10 = vsyncpa [#allocation3 + $0x1], 0 }
   0x2   :  { %11 = vsyncpa [#allocation4], 0 }
   0x3   :  { %13 = vsyncpa [#allocation4 + $0x1], 0  ;;  %s663_s12 = smov 0   ;;  %s665_s13 = smov 0  }
   0x4   :  { %s667_s14 = smov 0   ;;  %s669_s15 = smov 0  }
   0x5 LB: > { %s684_s16 = sadd.s32 4294967295, %s637_s15   ;;  %s456_s17 = sadd.s32 4294967294, %s637_s15   ;;  %s637_s15 = sphi %s669_s15, %s852_s15   ;;  %s633_s14 = sphi %s667_s14, %s851_s14   ;;  %s629_s13 = sphi %s665_s13, %s850_s13   ;;  %s625_s12 = sphi %s663_s12, %s849_s12  }
   0x6   : > { %s688_s18 = sadd.s32 1, %s637_s15   ;;  %s26_s19 = sadd.s32 1, %s633_s14 }
   0x7   : > { %s23_s20 = ssub.s32 %s637_s15, %s688_s18  ;;  %p33_p0 = scmp.ne.s32.totalorder %s633_s14, %s629_s13 }
   0x8   : > { %p24_p1 = scmp.eq.s32.totalorder %s23_s20, 0  ;;  %p34_p2 = scmp.eq.s32.totalorder %s637_s15, 0 }
   0x9   : > { %p39_p3 = scmp.ne.s32.totalorder %s629_s13, %s625_s12  ;;  %p40_p4 = scmp.eq.s32.totalorder %s684_s16, 0 }
   0xa   : > { %s700_s21 = scalar_select %p24_p1, %s633_s14, %s26_s19  }
   0xb   : > { %p702_p5 = por %p34_p2, %p33_p0  ;;  %p706_p6 = por %p40_p4, %p39_p3 }
   0xc   : > { %p105_p7 = scmp.eq.s32.totalorder %s684_s16, 1  ;;  %p111_p8 = scmp.eq.s32.totalorder %s456_s17, 1 }
   0xd   : > { %p501_p10 = scmp.lt.s32.totalorder %s637_s15, 2  ;;  %s137_s26 = sand.u32 1, %s633_s14  }
   0xe   : > { %p713_p11 = por %p105_p7, %p33_p0  ;;  %p717_p12 = por %p111_p8, %p39_p3 }
   0xf   : > { %s473_s27 = sshll.u32 %s637_s15, 8  ;;  %s459_s28 = sshll.u32 %s137_s26, 4 }
  0x10   : > { %s841_s24 = scalar_select %p713_p11, 1, 0 }
  0x11   : > { %s842_s25 = scalar_select %p717_p12, 1, 0 }
  0x12   : > { %s726_s4 = scalar_lea.hbm %s834_s0, %s473_s27  ;;  %s141_s5 = scalar_lea.vmem [#allocation2], %s459_s28 }
  0x13   : > { %s149_s6 = sshll.u32 %s141_s5, 4  ;;  %p730_p13 = pnand %p501_p10, %p702_p5  ;;  %s734_s6 = int_to_ptr.vmem [resolvable:$true] %s149_s6 }
  0x14   : > { %s138_s8 = scalar_lea.sflag [#allocation3], %s137_s26  ;;  %s541_s9 = scalar_lea.hbm %s726_s4, 256 }
  0x15   : > { %p542_p2 = scmp.ne.s32.totalorder %s726_s4, %s541_s9  ;;  %p543_p3 = pneg %p730_p13 }
  0x16   : > { %s546_s17 = scalar_lea.hbm %s834_s0, 512  ;;  %p547_p5 = scmp.lt.u32.totalorder %s726_s4, %s834_s0 }
  0x17   : > { %p544_p4 = pnand %p543_p3, %p542_p2  ;;  %p548_p8 = scmp.lt.u32.totalorder %s546_s17, %s541_s9 }
  0x18   : > { %p550_p9 = scmp.lt.u32.totalorder %s541_s9, %s726_s4 }
  0x19   : > { %p545_p7 = pneg %p544_p4  ;;  %p549_p10 = por %p548_p8, %p547_p5 }
  0x1b   : > { %p551_p0 = por %p550_p9, %p549_p10 }
  0x1d   : > { %p552_p1 = pnand %p551_p0, %p545_p7 }
  0x1f   : > { %555 = shalt.err (!%p552_p1)
}
  0x20   : > { %s556_s22 = scalar_lea.vmem %s734_s6, 256  ;;  %s639_s26 = smov [#allocation2]  }
  0x21   : > { %p557_p2 = scmp.ne.s32.totalorder %s734_s6, %s556_s22  ;;  %s561_s27 = sshll.u32 %s639_s26, 4  ;;  %s562_s27 = int_to_ptr.vmem [resolvable:$false] %s561_s27 }
  0x22   : > { %s563_s28 = scalar_lea.vmem %s562_s27, 512  ;;  %p564_p11 = scmp.lt.s32.totalorder %s734_s6, %s562_s27 }
  0x23   : > { %p559_p4 = pnand %p557_p2, %p543_p3  ;;  %p565_p5 = scmp.lt.s32.totalorder %s563_s28, %s556_s22 }
  0x25   : > { %p560_p12 = pneg %p559_p4  ;;  %p566_p8 = por %p565_p5, %p564_p11 }
  0x27   : > { %p567_p9 = pnand %p566_p8, %p560_p12 }
  0x29   : > { %570 = shalt.err (!%p567_p9)
}
  0x2a   : > { %496 = dma.hbm_to_vmem [thread:$0]  (!%p730_p13), %s726_s4, 256, %s734_s6, %s138_s8  }
  0x2b   : > { %p844_p0 = scmp.lt.s32.totalorder %s637_s15, 3  ;;  %p845_p1 = scmp.ge.s32.totalorder %s637_s15, 1 }
  0x2d   : > { %p155_p3 = pnand %p845_p1, %p844_p0 }
  0x2e   : > { %s768_s29 = sand.u32 (!%p155_p3), 1, %s629_s13  }
  0x2f   : > { %158 = sbr.rel (%p155_p3) target bundleno = 791 (0x317), region = 32  ;;  %s463_s30 = sshll.u32 (!%p155_p3), %s768_s29, 4 }
  0x30   : > { %s161_s5 = scalar_lea.sflag (!%p155_p3), [#allocation3], %s768_s29  ;;  %s164_s7 = scalar_lea.vmem (!%p155_p3), [#allocation2], %s463_s30 }
  0x36   : > { %616 = dma.done.wait (%p706_p6), %s161_s5, 256  }
  0x37   : > { %618 = vsyncadd (%p706_p6), %s161_s5, 4294967040  ;;  %v187_v0 = vld [vmem:[%s164_s7] sm:$0xff]  ;;  %v188_v1 = vld [vmem:[%s164_s7 + $0x8] sm:$0xff]  ;;  %v640_v3 = vmov 0.0   ;;  %vm641_vm0 = vmmov 0   ;;  %v195_v5 = vlaneseq  ;;  %vm201_vm1 = vcmask 64512  }
  0x38   : > { %v189_v2 = vadd.f32 %v188_v1, %v187_v0  ;;  %479 = vmatprep.subr.mxu0 %v640_v3  ;;  %v193_v4 = vld [vmem:[%s835_s1] sm:$0xff]  ;;  %484 = vmatprep.subr.mxu1 %v640_v3  ;;  %vm280_vm2 = vcmask 1041408   ;;  %vm276_vm3 = vcmask 15360   ;;  %s474_s9 = sshll.u32 %s684_s16, 8  ;;  %s186_s10 = scalar_lea.vmem [#allocation5], %s463_s30 }
  0x39   : > { %480 = vmatpush3.msra.mxu0 %v193_v4  ;;  %481 = vmatprep.mubr.msk.f32.mxu0 %vm641_vm0, %v640_v3  ;;  %v196_v6 = vand.u32 127, %v195_v5  ;;  %v198_v7 = vshrl.u32 %v195_v5, 7  ;;  %v275_v12 = vld [vmem:[%s836_s2] sm:$0x3]  ;;  %s386_s11 = sshll.u32 %s186_s10, 4  ;;  %s790_s20 = scalar_lea.hbm %s837_s3, %s474_s9  ;;  %s792_s11 = int_to_ptr.vmem [resolvable:$true] %s386_s11 }
  0x3a   : > { %190 = vadd.xlane.f32.xlu0 %v189_v2  ;;  %486 = vmatprep.mubr.msk.f32.mxu1 %vm641_vm0, %v640_v3  ;;  %s372_s22 = scalar_lea.sflag [#allocation4], %s768_s29  ;;  %s571_s16 = scalar_lea.vmem %s792_s11, 256 }
  0x3b   : > { %v199_v8 = vsub.s32 %v196_v6, %v198_v7  ;;  %485 = vmatpush3.msk.msra.mxu1 %vm280_vm2, %v275_v12  ;;  %v362_v22 = vsub.s32 0, %v198_v7  ;;  %p572_p6 = scmp.ne.s32.totalorder %s792_s11, %s571_s16  ;;  %p846_p11 = scmp.ne.s32.totalorder %s841_s24, 0 }
  0x3c   : > { %s642_s26 = smov [#allocation5]  }
  0x3d   : > { %p573_p12 = pnand %p572_p6, %p846_p11  ;;  %s575_s27 = sshll.u32 %s642_s26, 4  ;;  %s576_s27 = int_to_ptr.vmem [resolvable:$false] %s575_s27 }
  0x3e   : > { %s577_s28 = scalar_lea.vmem %s576_s27, 512  ;;  %p578_p7 = scmp.lt.s32.totalorder %s792_s11, %s576_s27 }
  0x3f   : > { %p574_p13 = pneg %p573_p12  ;;  %p579_p10 = scmp.lt.s32.totalorder %s577_s28, %s571_s16 }
  0x41   : > { %p580_p2 = por %p579_p10, %p578_p7 }
  0x43   : > { %p581_p4 = pnand %p580_p2, %p574_p13 }
  0xc7   : > { %v191_v9 = vpop.xlane.xlu0 %190 }
  0xc8   : > { %v192_v10 = vmul.f32 0.00390625, %v191_v9 }
  0xca   : > { %v200_v11 = vrot.slane %v192_v10, %v199_v8 }
  0xcc   : > { %482 = vmatmul.mubr.msk.f32.vlgmr.msra.gmra.mrb[0].mxu0 %vm201_vm1, %v200_v11 }
 0x19f   : > { %v270_v13 = vpop.f32.mrb[0].mxu0 }
 0x1a0   : > { %v274_v14 = vmax.f32 %v270_v13, 0.0  ;;  %v483_v15 = vpop.f32.mrb[1].mxu0 }
 0x1a2   : > { %487 = vmatmul.mubr.msk.f32.vlgmr.msra.gmra.mrb[0].mxu1 %vm276_vm3, %v274_v14 }
 0x275   : > { %v350_v16 = vpop.f32.mrb[0].mxu1 }
 0x276   : > { %v354_v17 = vsub.f32 0.0, %v350_v16  ;;  %v488_v18 = vpop.f32.mrb[1].mxu1 }
 0x278   : > { %v355_v19 = vmul.f32 1.442695, %v354_v17 }
 0x27a   : > { %537 = vpow2.f32 %v355_v19 }
 0x284   : > { %v538_v20 = vpop.eup %537 }
 0x285   : > { %v357_v21 = vadd.f32 1.0, %v538_v20 }
 0x287   : > { %539 = vrcp.f32 %v357_v21 }
 0x291   : > { %v540_v23 = vpop.eup %539 }
 0x292   : > { %v363_v24 = vrot.slane %v540_v23, %v362_v22 }
 0x294   : > { %365 = vbcast.lane.b32.xlu0 %v363_v24, 256 }
 0x306   : > { %v366_v25 = vpop.permute.xlu0 %365 }
 0x307   : > { %v367_v26 = vmul.f32 %v366_v25, %v187_v0  ;;  %v368_v27 = vmul.f32 %v366_v25, %v188_v1 }
 0x309   : > { %369 = vst [vmem:[%s186_s10] sm:$0xff] %v367_v26  ;;  %370 = vst [vmem:[%s186_s10 + $0x8] sm:$0xff] %v368_v27 }
 0x30a   : > { %584 = shalt.err (!%p581_p4)
}
 0x30b   : > { %s585_s29 = scalar_lea.hbm %s790_s20, 256  ;;  %s589_s7 = scalar_lea.hbm %s837_s3, 512 }
 0x30c   : > { %p586_p5 = scmp.ne.s32.totalorder %s790_s20, %s585_s29  ;;  %p590_p0 = scmp.lt.u32.totalorder %s790_s20, %s837_s3 }
 0x30d   : > { %p591_p1 = scmp.lt.u32.totalorder %s589_s7, %s585_s29  ;;  %p593_p6 = scmp.lt.u32.totalorder %s585_s29, %s790_s20 }
 0x30e   : > { %p587_p8 = pnand %p586_p5, %p846_p11 }
 0x30f   : > { %p592_p3 = por %p591_p1, %p590_p0 }
 0x310   : > { %p588_p9 = pneg %p587_p8 }
 0x311   : > { %p594_p12 = por %p593_p6, %p592_p3 }
 0x313   : > { %p595_p13 = pnand %p594_p12, %p588_p9 }
 0x315   : > { %598 = shalt.err (!%p595_p13)
}
 0x316   : > { %491 = dma.vmem_to_hbm [thread:$0]  (%p846_p11), %s792_s11, 256, %s790_s20, %s372_s22  }
 0x317 PF: > { %s398_s23 = sand.u32 1, %s625_s12   ;;  %p847_p7 = scmp.ne.s32.totalorder %s842_s25, 0 }
 0x318   : > { %p848_p10 = scmp.ge.s32.totalorder %s637_s15, 2  ;;  %s399_s8 = scalar_lea.sflag [#allocation4], %s398_s23 }
 0x31a   : > { %p498_p2 = pnand %p848_p10, %p847_p7 }
 0x31c   : > { %620 = dma.done.wait (!%p498_p2), %s399_s8, 256  }
 0x31d   : > { %622 = vsyncadd (!%p498_p2), %s399_s8, 4294967040  ;;  %p16_p4 = scmp.ge.s32.totalorder %s688_s18, 4   ;;  %s849_s12 = smov %s629_s13 }
 0x31e   : > { %s850_s13 = smov %s633_s14  ;;  %s851_s14 = smov %s700_s21 }
 0x31f   : > { %s852_s15 = smov %s688_s18  ;;  %18 = sbr.rel (!%p16_p4) target bundleno = 5 (0x5), region = 77 }
 0x326   :  { %404 = vsyncpa [#allocation3], 1 }
 0x327   :  { %406 = vsyncpa [#allocation3 + $0x1], 1 }
 0x328   :  { %407 = vsyncpa [#allocation4], 1 }
 0x329   :  { %409 = vsyncpa [#allocation4 + $0x1], 1 }

</bundles_post_ra>
